<compile_context>
chip_gen: v7x
topology: tpu7x:2x2x1
jax: 0.10.0
libtpu: 0.0.40
codegen_flags: <defaults>
</compile_context>

<pallas_src>
import functools

import jax
import jax.numpy as jnp
from jax.experimental import pallas as pl
from jax.experimental.pallas import tpu as pltpu

# ---- model hyper-parameters (small, consistent with DecoderModel.__init__) ----
B = 2        # batch size
N = 8        # num_nodes
U = 16       # rnn_units
O = 2        # output_dim
K = 2        # max_diffusion_step
L = 2        # num_rnn_layers
M = K + 1    # number of diffusion matrices

_VMEM = pl.BlockSpec(memory_space=pltpu.MemorySpace.VMEM)


def _round8(x):
    return (x + 7) // 8 * 8


def _slab_layout(num_layers, rnn_units, max_diffusion_step):
    """Row layout of the single packed weight/bias slab (all offsets 8-row aligned)."""
    m = max_diffusion_step + 1
    u = rnn_units
    lay = {"wbig_stride": _round8(m * 2 * u), "whc_stride": _round8(m * u), "cols": 3 * u}
    off = 0
    lay["wbig_off"] = off
    off += num_layers * lay["wbig_stride"]
    lay["whc_off"] = off
    off += num_layers * lay["whc_stride"]
    lay["proj_off"] = off
    off += _round8(u)
    lay["bias_off"] = off
    off += 8 * (num_layers + 1)
    lay["rows"] = off
    return lay


# --------------------------- fused decoder kernel ---------------------------

def _decoder_kernel(adj_ref, x_ref, h_ref, w_ref, out_ref, h_out_ref, adj_big_ref, *,
                    num_layers, max_diffusion_step, num_nodes, rnn_units, out_dim,
                    batch, horizon, layout):
    """DecoderModel.forward (all DCGRU layers + projection), optionally rolled out over
    `horizon` autoregressive steps, entirely inside one kernel.

    adj (N,N) f32 | x (B*N, U) f32 (features zero-padded to U) | h (L, B*N, U) f32
    w  (slab_rows, 3U) f32 packed weights/biases
    out (horizon, B*N, O) f32 | h_out (L, B*N, U) f32 | adj_big scratch (B*N, B*N) f32
    """
    n, bsz, u, o = num_nodes, batch, rnn_units, out_dim
    rows = bsz * n
    m = max_diffusion_step + 1
    twou = 2 * u

    # ---- adjacency: random-walk normalize + transpose + block-diagonalize, ONCE ----
    a = adj_ref[...]
    eye = (jax.lax.broadcasted_iota(jnp.int32, (n, n), 0)
           == jax.lax.broadcasted_iota(jnp.int32, (n, n), 1)).astype(a.dtype)
    a = a + eye
    d_inv = 1.0 / jnp.sum(a, axis=1, keepdims=True)
    d_inv = jnp.where(jnp.isinf(d_inv), jnp.zeros_like(d_inv), d_inv)
    adj_t = jnp.transpose(d_inv * a)                                     # (N, N)

    # block-diagonal I_B (x) adj_t written straight into scratch (no concat chains)
    adj_big_ref[...] = jnp.zeros_like(adj_big_ref)
    for bi in range(bsz):
        adj_big_ref[bi * n:(bi + 1) * n, bi * n:(bi + 1) * n] = adj_t
    adj_big = adj_big_ref[...]                                           # (B*N, B*N)

    def diffuse_cat(feat):
        # feat (B*N, F) -> [T_0 f | T_1 f | ... | T_K f] : (B*N, M*F), all f32
        outs = [feat]
        if max_diffusion_step > 0:
            x1 = jnp.dot(adj_big, feat, preferred_element_type=jnp.float32)
            outs.append(x1)
            xk1, xk2 = x1, feat
            for _ in range(2, max_diffusion_step + 1):
                x2 = 2.0 * jnp.dot(adj_big, xk1, preferred_element_type=jnp.float32) - xk2
                outs.append(x2)
                xk1, xk2 = x2, xk1
        return jnp.concatenate(outs, axis=-1)

    # ---- static slab views (zero-cost slices) ----
    WBIG, WHC, PROJ, BIAS = (layout["wbig_off"], layout["whc_off"],
                             layout["proj_off"], layout["bias_off"])
    WBS, WHS = layout["wbig_stride"], layout["whc_stride"]
    proj_w = w_ref[PROJ:PROJ + u, 0:o]                                     # (U, O)
    proj_b = w_ref[BIAS + 8 * num_layers:BIAS + 8 * num_layers + 1, 0:o]   # (1, O)

    h_cur = [h_ref[l] for l in range(num_layers)]                          # each (B*N, U)
    x_in = x_ref[...]                                                       # (B*N, U)

    for t in range(horizon):
        cur = x_in
        for layer in range(num_layers):
            h_prev = h_cur[layer]
            # joint diffusion of [x | h] shared by gate AND candidate x-part
            dxh = diffuse_cat(jnp.concatenate([cur, h_prev], axis=-1))      # (B*N, M*2U)
            wbig = w_ref[WBIG + layer * WBS:WBIG + layer * WBS + m * twou, :]
            g = jnp.dot(dxh, wbig, preferred_element_type=jnp.float32)       # (B*N, 3U)
            bias = w_ref[BIAS + 8 * layer:BIAS + 8 * layer + 1, :]           # (1, 3U)

            ru = jax.nn.sigmoid(g[:, :twou] + bias[:, :twou])                # (B*N, 2U)
            r, ug = ru[:, :u], ru[:, u:]

            drh = diffuse_cat(r * h_prev)                                    # (B*N, M*U)
            whc = w_ref[WHC + layer * WHS:WHC + layer * WHS + m * u, 0:u]
            c = jnp.tanh(g[:, twou:]
                         + jnp.dot(drh, whc, preferred_element_type=jnp.float32)
                         + bias[:, twou:])                                   # (B*N, U)

            new_h = ug * h_prev + (1.0 - ug) * c
            h_cur[layer] = new_h
            cur = new_h

        out_t = jnp.dot(cur, proj_w, preferred_element_type=jnp.float32) + proj_b
        out_ref[t] = out_t                                                   # (B*N, O)
        if t + 1 < horizon:
            # autoregressive feedback: next input = this step's projection (zero-padded)
            x_in = jnp.concatenate(
                [out_t, jnp.zeros((rows, u - o), jnp.float32)], axis=-1)

    for layer in range(num_layers):
        h_out_ref[layer] = h_cur[layer]


# --------------------------- wrappers ---------------------------

def _call_decoder(x_pad, adj, h, w_slab, horizon):
    rows = x_pad.shape[0]
    layout = _slab_layout(L, U, K)
    kernel = functools.partial(
        _decoder_kernel, num_layers=L, max_diffusion_step=K, num_nodes=N,
        rnn_units=U, out_dim=O, batch=rows // N, horizon=horizon, layout=layout)
    return pl.pallas_call(
        kernel,
        out_shape=(jax.ShapeDtypeStruct((horizon, rows, O), jnp.float32),
                   jax.ShapeDtypeStruct((L, rows, U), jnp.float32)),
        in_specs=[_VMEM, _VMEM, _VMEM, _VMEM],
        out_specs=(_VMEM, _VMEM),
        scratch_shapes=[pltpu.VMEM((rows, rows), jnp.float32)],
        input_output_aliases={2: 1},          # hidden state in -> hidden state out
    )(adj, x_pad, h, w_slab)


@jax.jit
def decoder_forward(inputs, adj, hidden_state, w_slab):
    """Faithful DecoderModel.forward (one step).
    inputs (B, N*O) | adj (N, N) | hidden_state (L, B, N*U) | w_slab packed weights
    -> (output (B, N*O), new_hidden (L, B, N*U))
    """
    bsz = inputs.shape[0]
    x = inputs.reshape(bsz * N, O)
    x = jnp.pad(x, ((0, 0), (0, U - O)))                 # free host-side feature pad
    h = hidden_state.reshape(L, bsz * N, U)
    out_seq, new_h = _call_decoder(x, adj, h, w_slab, horizon=1)
    return out_seq[0].reshape(bsz, N * O), new_h.reshape(L, bsz, N * U)


@functools.partial(jax.jit, static_argnames=("horizon",))
def decoder_rollout(inputs, adj, hidden_state, w_slab, horizon):
    """Seq2seq horizon loop fused into ONE kernel (autoregressive feedback in VMEM)."""
    bsz = inputs.shape[0]
    x = inputs.reshape(bsz * N, O)
    x = jnp.pad(x, ((0, 0), (0, U - O)))
    h = hidden_state.reshape(L, bsz * N, U)
    out_seq, new_h = _call_decoder(x, adj, h, w_slab, horizon=horizon)
    return out_seq.reshape(horizon, bsz, N * O), new_h.reshape(L, bsz, N * U)


# --------------------------- parameters (torch layout) + packing ---------------------------

def _xavier_normal(key, shape):
    fan_in, fan_out = shape
    std = (2.0 / (fan_in + fan_out)) ** 0.5
    return std * jax.random.normal(key, shape, dtype=jnp.float32)


def init_params(key):
    """Weights in the PyTorch gconv layout: rows indexed i*M + k (x features, then state)."""
    params = {"layers": []}
    for layer in range(L):
        d_in = O if layer == 0 else U
        isz = d_in + U
        key, k1, k2 = jax.random.split(key, 3)
        params["layers"].append({
            "w_ru": _xavier_normal(k1, (isz * M, 2 * U)),
            "b_ru": jnp.full((2 * U,), 1.0, dtype=jnp.float32),   # bias_start = 1.0
            "w_c": _xavier_normal(k2, (isz * M, U)),
            "b_c": jnp.zeros((U,), dtype=jnp.float32),            # bias_start = 0.0
        })
    key, kp = jax.random.split(key)
    # NOTE: torch nn.Linear.weight is (out, in); stored here pre-transposed as (in, out).
    params["proj_w"] = _xavier_normal(kp, (U, O))
    params["proj_b"] = jnp.zeros((O,), dtype=jnp.float32)
    return params


def _pack_layer(w_ru, w_c, d_in, u, m):
    """torch row order i*M+k -> kernel layout: k-major blocks of [x(padded to u) | h]."""
    w_ru3 = w_ru.reshape(d_in + u, m, 2 * u)                 # [i, k, :]
    w_c3 = w_c.reshape(d_in + u, m, u)
    gate_x = jnp.zeros((u, m, 2 * u), jnp.float32).at[:d_in].set(w_ru3[:d_in])
    gate = jnp.concatenate([gate_x, w_ru3[d_in:]], axis=0)   # (2u, m, 2u)
    cand_x = jnp.zeros((u, m, u), jnp.float32).at[:d_in].set(w_c3[:d_in])
    cand = jnp.concatenate([cand_x, jnp.zeros((u, m, u), jnp.float32)], axis=0)
    wbig = jnp.concatenate([gate, cand], axis=-1)            # (2u, m, 3u)  [j, k, :]
    wbig = wbig.transpose(1, 0, 2).reshape(m * 2 * u, 3 * u)  # row = k*2u + j
    whc = w_c3[d_in:].transpose(1, 0, 2).reshape(m * u, u)    # row = k*u + s
    return wbig, whc


def pack_params(params):
    """Pack every weight/bias into one (rows, 3U) f32 slab -> a single kernel input DMA."""
    lay = _slab_layout(L, U, K)
    slab = jnp.zeros((lay["rows"], lay["cols"]), jnp.float32)
    for l, lp in enumerate(params["layers"]):
        d_in = O if l == 0 else U
        wbig, whc = _pack_layer(lp["w_ru"], lp["w_c"], d_in, U, M)
        r0 = lay["wbig_off"] + l * lay["wbig_stride"]
        slab = slab.at[r0:r0 + wbig.shape[0], :].set(wbig)
        r1 = lay["whc_off"] + l * lay["whc_stride"]
        slab = slab.at[r1:r1 + whc.shape[0], :U].set(whc)
        slab = slab.at[lay["bias_off"] + 8 * l, :2 * U].set(lp["b_ru"])
        slab = slab.at[lay["bias_off"] + 8 * l, 2 * U:3 * U].set(lp["b_c"])
    slab = slab.at[lay["proj_off"]:lay["proj_off"] + U, :O].set(params["proj_w"])
    slab = slab.at[lay["bias_off"] + 8 * L, :O].set(params["proj_b"])
    return slab


# --------------------------- pure-JAX reference (port of the torch module) ---------------------------

def _gconv_ref(x_flat, adj_t, state_flat, w, b, bsz, n, k_max):
    x = x_flat.reshape(bsz, n, -1)
    state = state_flat.reshape(bsz, n, -1)
    xs = jnp.concatenate([x, state], axis=2)
    input_size = xs.shape[2]
    x0 = xs.transpose(1, 2, 0).reshape(n, input_size * bsz)
    mats = [x0]
    if k_max > 0:
        x1 = adj_t @ x0
        mats.append(x1)
        for _ in range(2, k_max + 1):
            x2 = 2.0 * (adj_t @ x1) - x0
            mats.append(x2)
            x1, x0 = x2, x1
    num_m = k_max + 1
    xc = jnp.stack(mats, axis=0).reshape(num_m, n, input_size, bsz)
    xc = xc.transpose(3, 1, 2, 0).reshape(bsz * n, input_size * num_m)
    val = xc @ w + b
    return val.reshape(bsz, n * w.shape[-1])


def _dcgru_cell_ref(x_flat, h_flat, adj, lp, bsz, n, u, k_max):
    a = adj + jnp.eye(adj.shape[0], dtype=adj.dtype)
    d_inv = 1.0 / jnp.sum(a, axis=1)
    d_inv = jnp.where(jnp.isinf(d_inv), 0.0, d_inv)
    adj_t = (jnp.diag(d_inv) @ a).T
    value = jax.nn.sigmoid(
        _gconv_ref(x_flat, adj_t, h_flat, lp["w_ru"], lp["b_ru"], bsz, n, k_max))
    value = value.reshape(-1, n, 2 * u)
    r = value[..., :u].reshape(-1, n * u)
    ug = value[..., u:].reshape(-1, n * u)
    c = jnp.tanh(_gconv_ref(x_flat, adj_t, r * h_flat, lp["w_c"], lp["b_c"], bsz, n, k_max))
    return ug * h_flat + (1.0 - ug) * c


def decoder_forward_ref(inputs, adj, hidden_state, params):
    output = inputs
    new_h = []
    for l in range(L):
        nh = _dcgru_cell_ref(output, hidden_state[l], adj, params["layers"][l],
                             inputs.shape[0], N, U, K)
        new_h.append(nh)
        output = nh
    proj = output.reshape(-1, U) @ params["proj_w"] + params["proj_b"]
    return proj.reshape(-1, N * O), jnp.stack(new_h)


# TODO(synk): LayerParams lazy parameter registration and DCGRUCell._build_sparse_matrix
# (sparse-COO path, unused by this forward) are host-side bookkeeping, not kernel work.


if __name__ == "__main__":
    key = jax.random.PRNGKey(0)
    k_in, k_adj, k_h, k_p = jax.random.split(key, 4)

    inputs = jax.random.normal(k_in, (B, N * O), dtype=jnp.float32)
    adj = jax.random.uniform(k_adj, (N, N), dtype=jnp.float32)
    hidden_state = jax.random.normal(k_h, (L, B, N * U), dtype=jnp.float32) * 0.1
    params = init_params(k_p)
    w_slab = pack_params(params)

    # ---- single step: faithful DecoderModel.forward ----
    out, new_hidden = decoder_forward(inputs, adj, hidden_state, w_slab)
    jax.block_until_ready((out, new_hidden))
    assert out.shape == (B, N * O)
    assert new_hidden.shape == (L, B, N * U)

    out_r, h_r = decoder_forward_ref(inputs, adj, hidden_state, params)
    assert jnp.allclose(out, out_r, atol=2e-2, rtol=2e-2)
    assert jnp.allclose(new_hidden, h_r, atol=2e-2, rtol=2e-2)

    # ---- fused multi-step rollout: horizon loop inside one kernel launch ----
    T = 4
    outs_roll, h_roll = decoder_rollout(inputs, adj, hidden_state, w_slab, horizon=T)
    jax.block_until_ready((outs_roll, h_roll))

    x_step, h_step = inputs, hidden_state
    for t in range(T):
        o_step, h_step = decoder_forward_ref(x_step, adj, h_step, params)
        assert jnp.allclose(outs_roll[t], o_step, atol=5e-2, rtol=5e-2)
        x_step = o_step
    assert jnp.allclose(h_roll, h_step, atol=5e-2, rtol=5e-2)

    print("KERNEL_OK")
</pallas_src>

<mosaic_0001>
module attributes {stable_mosaic.version = 11 : i64} {
  func.func @_decoder_kernel(%arg0: memref<8x8xf32, #tpu.memory_space<vmem>>, %arg1: memref<16x16xf32, #tpu.memory_space<vmem>>, %arg2: memref<2x16x16xf32, #tpu.memory_space<vmem>>, %arg3: memref<328x48xf32, #tpu.memory_space<vmem>>, %arg4: memref<1x16x2xf32, #tpu.memory_space<vmem>>, %arg5: memref<2x16x16xf32, #tpu.memory_space<vmem>>, %arg6: memref<16x16xf32, #tpu.memory_space<vmem>>) attributes {dimension_semantics = [], scalar_prefetch = 0 : i64, scratch_operands = 1 : i64, tpu.core_type = #tpu.core_type<tc>} {
    %c0 = arith.constant 0 : index
    %c0_0 = arith.constant 0 : index
    %0 = vector.load %arg0[%c0, %c0_0] : memref<8x8xf32, #tpu.memory_space<vmem>>, vector<8x8xf32>
    %1 = tpu.iota {dimensions = array<i32: 0>} : vector<8x8xi32>
    %2 = tpu.iota {dimensions = array<i32: 1>} : vector<8x8xi32>
    %3 = arith.cmpi eq, %1, %2 : vector<8x8xi32>
    %4 = arith.extui %3 : vector<8x8xi1> to vector<8x8xi32>
    %5 = arith.sitofp %4 : vector<8x8xi32> to vector<8x8xf32>
    %6 = arith.addf %0, %5 : vector<8x8xf32>
    %cst = arith.constant dense<0.000000e+00> : vector<8xf32>
    %7 = vector.multi_reduction <add>, %6, %cst [1] : vector<8x8xf32> to vector<8xf32>
    %8 = vector.shape_cast %7 : vector<8xf32> to vector<8x1xf32>
    %cst_1 = arith.constant 1.000000e+00 : f32
    %9 = vector.broadcast %cst_1 : f32 to vector<8x1xf32>
    %10 = arith.divf %9, %8 : vector<8x1xf32>
    %11 = math.absf %10 : vector<8x1xf32>
    %cst_2 = arith.constant 0x7F800000 : f32
    %12 = vector.broadcast %cst_2 : f32 to vector<8x1xf32>
    %13 = arith.cmpf oeq, %11, %12 : vector<8x1xf32>
    %cst_3 = arith.constant 0.000000e+00 : f32
    %14 = vector.broadcast %cst_3 : f32 to vector<8x1xf32>
    %15 = arith.select %13, %14, %10 : vector<8x1xi1>, vector<8x1xf32>
    %16 = vector.broadcast %15 : vector<8x1xf32> to vector<8x8xf32>
    %17 = arith.mulf %16, %6 : vector<8x8xf32>
    %18 = tpu.transpose %17, [1, 0] : vector<8x8xf32> -> vector<8x8xf32>
    %cst_4 = arith.constant 0.000000e+00 : f32
    %19 = vector.broadcast %cst_4 : f32 to vector<16x16xf32>
    %c0_5 = arith.constant 0 : index
    %c0_6 = arith.constant 0 : index
    %20 = vector.load %arg6[%c0_5, %c0_6] : memref<16x16xf32, #tpu.memory_space<vmem>>, vector<16x16xf32>
    tpu.vector_store %arg6[%c0_5, %c0_6], %19 {strides = array<i32>} : memref<16x16xf32, #tpu.memory_space<vmem>>, vector<16x16xf32>,
    %c0_7 = arith.constant 0 : index
    %c0_8 = arith.constant 0 : index
    %21 = vector.load %arg6[%c0_7, %c0_8] : memref<16x16xf32, #tpu.memory_space<vmem>>, vector<8x8xf32>
    tpu.vector_store %arg6[%c0_7, %c0_8], %18 {strides = array<i32>} : memref<16x16xf32, #tpu.memory_space<vmem>>, vector<8x8xf32>,
    %c8 = arith.constant 8 : index
    %c8_9 = arith.constant 8 : index
    %22 = vector.load %arg6[%c8, %c8_9] : memref<16x16xf32, #tpu.memory_space<vmem>>, vector<8x8xf32>
    tpu.vector_store %arg6[%c8, %c8_9], %18 {strides = array<i32>} : memref<16x16xf32, #tpu.memory_space<vmem>>, vector<8x8xf32>,
    %c0_10 = arith.constant 0 : index
    %c0_11 = arith.constant 0 : index
    %23 = vector.load %arg6[%c0_10, %c0_11] : memref<16x16xf32, #tpu.memory_space<vmem>>, vector<16x16xf32>
    %c288 = arith.constant 288 : index
    %c0_12 = arith.constant 0 : index
    %24 = vector.load %arg3[%c288, %c0_12] : memref<328x48xf32, #tpu.memory_space<vmem>>, vector<16x2xf32>
    %c320 = arith.constant 320 : index
    %c0_13 = arith.constant 0 : index
    %25 = vector.load %arg3[%c320, %c0_13] : memref<328x48xf32, #tpu.memory_space<vmem>>, vector<1x2xf32>
    %c0_14 = arith.constant 0 : index
    %c0_15 = arith.constant 0 : index
    %c0_16 = arith.constant 0 : index
    %26 = vector.load %arg2[%c0_14, %c0_15, %c0_16] : memref<2x16x16xf32, #tpu.memory_space<vmem>>, vector<1x16x16xf32>
    %27 = vector.shape_cast %26 : vector<1x16x16xf32> to vector<16x16xf32>
    %c1 = arith.constant 1 : index
    %c0_17 = arith.constant 0 : index
    %c0_18 = arith.constant 0 : index
    %28 = vector.load %arg2[%c1, %c0_17, %c0_18] : memref<2x16x16xf32, #tpu.memory_space<vmem>>, vector<1x16x16xf32>
    %29 = vector.shape_cast %28 : vector<1x16x16xf32> to vector<16x16xf32>
    %c0_19 = arith.constant 0 : index
    %c0_20 = arith.constant 0 : index
    %30 = vector.load %arg1[%c0_19, %c0_20] : memref<16x16xf32, #tpu.memory_space<vmem>>, vector<16x16xf32>
    %31 = tpu.concatenate %30, %27 in 1 : vector<16x16xf32>, vector<16x16xf32> -> vector<16x32xf32>
    %cst_21 = arith.constant dense<0.000000e+00> : vector<16x32xf32>
    %32 = tpu.matmul %23, %31, %cst_21 {dimension_numbers = #tpu.dot_dimension_numbers<[1], [0], [0], [1], [0, 0, 1, 1], [], []>} : vector<16x16xf32>, vector<16x32xf32>, vector<16x32xf32> -> vector<16x32xf32>
    %cst_22 = arith.constant dense<0.000000e+00> : vector<16x32xf32>
    %33 = tpu.matmul %23, %32, %cst_22 {dimension_numbers = #tpu.dot_dimension_numbers<[1], [0], [0], [1], [0, 0, 1, 1], [], []>} : vector<16x16xf32>, vector<16x32xf32>, vector<16x32xf32> -> vector<16x32xf32>
    %cst_23 = arith.constant 2.000000e+00 : f32
    %34 = vector.broadcast %cst_23 : f32 to vector<16x32xf32>
    %35 = arith.mulf %34, %33 : vector<16x32xf32>
    %36 = arith.subf %35, %31 : vector<16x32xf32>
    %37 = tpu.concatenate %31, %32, %36 in 1 : vector<16x32xf32>, vector<16x32xf32>, vector<16x32xf32> -> vector<16x96xf32>
    %c0_24 = arith.constant 0 : index
    %c0_25 = arith.constant 0 : index
    %38 = vector.load %arg3[%c0_24, %c0_25] : memref<328x48xf32, #tpu.memory_space<vmem>>, vector<96x48xf32>
    %cst_26 = arith.constant dense<0.000000e+00> : vector<16x48xf32>
    %39 = tpu.matmul %37, %38, %cst_26 {dimension_numbers = #tpu.dot_dimension_numbers<[1], [0], [0], [1], [0, 0, 1, 1], [], []>} : vector<16x96xf32>, vector<96x48xf32>, vector<16x48xf32> -> vector<16x48xf32>
    %c304 = arith.constant 304 : index
    %c0_27 = arith.constant 0 : index
    %40 = vector.load %arg3[%c304, %c0_27] : memref<328x48xf32, #tpu.memory_space<vmem>>, vector<1x48xf32>
    %41 = vector.extract_strided_slice %39 {offsets = [0, 0], sizes = [16, 32], strides = [1, 1]} : vector<16x48xf32> to vector<16x32xf32>
    %42 = vector.extract_strided_slice %40 {offsets = [0, 0], sizes = [1, 32], strides = [1, 1]} : vector<1x48xf32> to vector<1x32xf32>
    %43 = vector.broadcast %42 : vector<1x32xf32> to vector<16x32xf32>
    %44 = arith.addf %41, %43 : vector<16x32xf32>
    %45 = arith.negf %44 : vector<16x32xf32>
    %46 = math.exp %45 : vector<16x32xf32>
    %cst_28 = arith.constant 1.000000e+00 : f32
    %47 = vector.broadcast %cst_28 : f32 to vector<16x32xf32>
    %48 = arith.addf %47, %46 : vector<16x32xf32>
    %49 = arith.divf %47, %48 : vector<16x32xf32>
    %50 = vector.extract_strided_slice %49 {offsets = [0, 0], sizes = [16, 16], strides = [1, 1]} : vector<16x32xf32> to vector<16x16xf32>
    %51 = vector.extract_strided_slice %49 {offsets = [0, 16], sizes = [16, 16], strides = [1, 1]} : vector<16x32xf32> to vector<16x16xf32>
    %52 = arith.mulf %50, %27 : vector<16x16xf32>
    %cst_29 = arith.constant dense<0.000000e+00> : vector<16x16xf32>
    %53 = tpu.matmul %23, %52, %cst_29 {dimension_numbers = #tpu.dot_dimension_numbers<[1], [0], [0], [1], [0, 0, 1, 1], [], []>} : vector<16x16xf32>, vector<16x16xf32>, vector<16x16xf32> -> vector<16x16xf32>
    %cst_30 = arith.constant dense<0.000000e+00> : vector<16x16xf32>
    %54 = tpu.matmul %23, %53, %cst_30 {dimension_numbers = #tpu.dot_dimension_numbers<[1], [0], [0], [1], [0, 0, 1, 1], [], []>} : vector<16x16xf32>, vector<16x16xf32>, vector<16x16xf32> -> vector<16x16xf32>
    %cst_31 = arith.constant 2.000000e+00 : f32
    %55 = vector.broadcast %cst_31 : f32 to vector<16x16xf32>
    %56 = arith.mulf %55, %54 : vector<16x16xf32>
    %57 = arith.subf %56, %52 : vector<16x16xf32>
    %58 = tpu.concatenate %52, %53, %57 in 1 : vector<16x16xf32>, vector<16x16xf32>, vector<16x16xf32> -> vector<16x48xf32>
    %c192 = arith.constant 192 : index
    %c0_32 = arith.constant 0 : index
    %59 = vector.load %arg3[%c192, %c0_32] : memref<328x48xf32, #tpu.memory_space<vmem>>, vector<48x16xf32>
    %60 = vector.extract_strided_slice %39 {offsets = [0, 32], sizes = [16, 16], strides = [1, 1]} : vector<16x48xf32> to vector<16x16xf32>
    %cst_33 = arith.constant dense<0.000000e+00> : vector<16x16xf32>
    %61 = tpu.matmul %58, %59, %cst_33 {dimension_numbers = #tpu.dot_dimension_numbers<[1], [0], [0], [1], [0, 0, 1, 1], [], []>} : vector<16x48xf32>, vector<48x16xf32>, vector<16x16xf32> -> vector<16x16xf32>
    %62 = arith.addf %60, %61 : vector<16x16xf32>
    %63 = vector.extract_strided_slice %40 {offsets = [0, 32], sizes = [1, 16], strides = [1, 1]} : vector<1x48xf32> to vector<1x16xf32>
    %64 = vector.broadcast %63 : vector<1x16xf32> to vector<16x16xf32>
    %65 = arith.addf %62, %64 : vector<16x16xf32>
    %66 = math.tanh %65 : vector<16x16xf32>
    %67 = arith.mulf %51, %27 : vector<16x16xf32>
    %cst_34 = arith.constant 1.000000e+00 : f32
    %68 = vector.broadcast %cst_34 : f32 to vector<16x16xf32>
    %69 = arith.subf %68, %51 : vector<16x16xf32>
    %70 = arith.mulf %69, %66 : vector<16x16xf32>
    %71 = arith.addf %67, %70 : vector<16x16xf32>
    %72 = tpu.concatenate %71, %29 in 1 : vector<16x16xf32>, vector<16x16xf32> -> vector<16x32xf32>
    %cst_35 = arith.constant dense<0.000000e+00> : vector<16x32xf32>
    %73 = tpu.matmul %23, %72, %cst_35 {dimension_numbers = #tpu.dot_dimension_numbers<[1], [0], [0], [1], [0, 0, 1, 1], [], []>} : vector<16x16xf32>, vector<16x32xf32>, vector<16x32xf32> -> vector<16x32xf32>
    %cst_36 = arith.constant dense<0.000000e+00> : vector<16x32xf32>
    %74 = tpu.matmul %23, %73, %cst_36 {dimension_numbers = #tpu.dot_dimension_numbers<[1], [0], [0], [1], [0, 0, 1, 1], [], []>} : vector<16x16xf32>, vector<16x32xf32>, vector<16x32xf32> -> vector<16x32xf32>
    %cst_37 = arith.constant 2.000000e+00 : f32
    %75 = vector.broadcast %cst_37 : f32 to vector<16x32xf32>
    %76 = arith.mulf %75, %74 : vector<16x32xf32>
    %77 = arith.subf %76, %72 : vector<16x32xf32>
    %78 = tpu.concatenate %72, %73, %77 in 1 : vector<16x32xf32>, vector<16x32xf32>, vector<16x32xf32> -> vector<16x96xf32>
    %c96 = arith.constant 96 : index
    %c0_38 = arith.constant 0 : index
    %79 = vector.load %arg3[%c96, %c0_38] : memref<328x48xf32, #tpu.memory_space<vmem>>, vector<96x48xf32>
    %cst_39 = arith.constant dense<0.000000e+00> : vector<16x48xf32>
    %80 = tpu.matmul %78, %79, %cst_39 {dimension_numbers = #tpu.dot_dimension_numbers<[1], [0], [0], [1], [0, 0, 1, 1], [], []>} : vector<16x96xf32>, vector<96x48xf32>, vector<16x48xf32> -> vector<16x48xf32>
    %c312 = arith.constant 312 : index
    %c0_40 = arith.constant 0 : index
    %81 = vector.load %arg3[%c312, %c0_40] : memref<328x48xf32, #tpu.memory_space<vmem>>, vector<1x48xf32>
    %82 = vector.extract_strided_slice %80 {offsets = [0, 0], sizes = [16, 32], strides = [1, 1]} : vector<16x48xf32> to vector<16x32xf32>
    %83 = vector.extract_strided_slice %81 {offsets = [0, 0], sizes = [1, 32], strides = [1, 1]} : vector<1x48xf32> to vector<1x32xf32>
    %84 = vector.broadcast %83 : vector<1x32xf32> to vector<16x32xf32>
    %85 = arith.addf %82, %84 : vector<16x32xf32>
    %86 = arith.negf %85 : vector<16x32xf32>
    %87 = math.exp %86 : vector<16x32xf32>
    %cst_41 = arith.constant 1.000000e+00 : f32
    %88 = vector.broadcast %cst_41 : f32 to vector<16x32xf32>
    %89 = arith.addf %88, %87 : vector<16x32xf32>
    %90 = arith.divf %88, %89 : vector<16x32xf32>
    %91 = vector.extract_strided_slice %90 {offsets = [0, 0], sizes = [16, 16], strides = [1, 1]} : vector<16x32xf32> to vector<16x16xf32>
    %92 = vector.extract_strided_slice %90 {offsets = [0, 16], sizes = [16, 16], strides = [1, 1]} : vector<16x32xf32> to vector<16x16xf32>
    %93 = arith.mulf %91, %29 : vector<16x16xf32>
    %cst_42 = arith.constant dense<0.000000e+00> : vector<16x16xf32>
    %94 = tpu.matmul %23, %93, %cst_42 {dimension_numbers = #tpu.dot_dimension_numbers<[1], [0], [0], [1], [0, 0, 1, 1], [], []>} : vector<16x16xf32>, vector<16x16xf32>, vector<16x16xf32> -> vector<16x16xf32>
    %cst_43 = arith.constant dense<0.000000e+00> : vector<16x16xf32>
    %95 = tpu.matmul %23, %94, %cst_43 {dimension_numbers = #tpu.dot_dimension_numbers<[1], [0], [0], [1], [0, 0, 1, 1], [], []>} : vector<16x16xf32>, vector<16x16xf32>, vector<16x16xf32> -> vector<16x16xf32>
    %cst_44 = arith.constant 2.000000e+00 : f32
    %96 = vector.broadcast %cst_44 : f32 to vector<16x16xf32>
    %97 = arith.mulf %96, %95 : vector<16x16xf32>
    %98 = arith.subf %97, %93 : vector<16x16xf32>
    %99 = tpu.concatenate %93, %94, %98 in 1 : vector<16x16xf32>, vector<16x16xf32>, vector<16x16xf32> -> vector<16x48xf32>
    %c240 = arith.constant 240 : index
    %c0_45 = arith.constant 0 : index
    %100 = vector.load %arg3[%c240, %c0_45] : memref<328x48xf32, #tpu.memory_space<vmem>>, vector<48x16xf32>
    %101 = vector.extract_strided_slice %80 {offsets = [0, 32], sizes = [16, 16], strides = [1, 1]} : vector<16x48xf32> to vector<16x16xf32>
    %cst_46 = arith.constant dense<0.000000e+00> : vector<16x16xf32>
    %102 = tpu.matmul %99, %100, %cst_46 {dimension_numbers = #tpu.dot_dimension_numbers<[1], [0], [0], [1], [0, 0, 1, 1], [], []>} : vector<16x48xf32>, vector<48x16xf32>, vector<16x16xf32> -> vector<16x16xf32>
    %103 = arith.addf %101, %102 : vector<16x16xf32>
    %104 = vector.extract_strided_slice %81 {offsets = [0, 32], sizes = [1, 16], strides = [1, 1]} : vector<1x48xf32> to vector<1x16xf32>
    %105 = vector.broadcast %104 : vector<1x16xf32> to vector<16x16xf32>
    %106 = arith.addf %103, %105 : vector<16x16xf32>
    %107 = math.tanh %106 : vector<16x16xf32>
    %108 = arith.mulf %92, %29 : vector<16x16xf32>
    %cst_47 = arith.constant 1.000000e+00 : f32
    %109 = vector.broadcast %cst_47 : f32 to vector<16x16xf32>
    %110 = arith.subf %109, %92 : vector<16x16xf32>
    %111 = arith.mulf %110, %107 : vector<16x16xf32>
    %112 = arith.addf %108, %111 : vector<16x16xf32>
    %cst_48 = arith.constant dense<0.000000e+00> : vector<16x2xf32>
    %113 = tpu.matmul %112, %24, %cst_48 {dimension_numbers = #tpu.dot_dimension_numbers<[1], [0], [0], [1], [0, 0, 1, 1], [], []>} : vector<16x16xf32>, vector<16x2xf32>, vector<16x2xf32> -> vector<16x2xf32>
    %114 = vector.broadcast %25 : vector<1x2xf32> to vector<16x2xf32>
    %115 = arith.addf %113, %114 : vector<16x2xf32>
    %c0_49 = arith.constant 0 : index
    %c0_50 = arith.constant 0 : index
    %c0_51 = arith.constant 0 : index
    %116 = vector.load %arg4[%c0_49, %c0_50, %c0_51] : memref<1x16x2xf32, #tpu.memory_space<vmem>>, vector<1x16x2xf32>
    %117 = vector.shape_cast %116 : vector<1x16x2xf32> to vector<16x2xf32>
    %118 = vector.shape_cast %115 : vector<16x2xf32> to vector<1x16x2xf32>
    tpu.vector_store %arg4[%c0_49, %c0_50, %c0_51], %118 {strides = array<i32>} : memref<1x16x2xf32, #tpu.memory_space<vmem>>, vector<1x16x2xf32>,
    %c0_52 = arith.constant 0 : index
    %c0_53 = arith.constant 0 : index
    %c0_54 = arith.constant 0 : index
    %119 = vector.load %arg5[%c0_52, %c0_53, %c0_54] : memref<2x16x16xf32, #tpu.memory_space<vmem>>, vector<1x16x16xf32>
    %120 = vector.shape_cast %119 : vector<1x16x16xf32> to vector<16x16xf32>
    %121 = vector.shape_cast %71 : vector<16x16xf32> to vector<1x16x16xf32>
    tpu.vector_store %arg5[%c0_52, %c0_53, %c0_54], %121 {strides = array<i32>} : memref<2x16x16xf32, #tpu.memory_space<vmem>>, vector<1x16x16xf32>,
    %c1_55 = arith.constant 1 : index
    %c0_56 = arith.constant 0 : index
    %c0_57 = arith.constant 0 : index
    %122 = vector.load %arg5[%c1_55, %c0_56, %c0_57] : memref<2x16x16xf32, #tpu.memory_space<vmem>>, vector<1x16x16xf32>
    %123 = vector.shape_cast %122 : vector<1x16x16xf32> to vector<16x16xf32>
    %124 = vector.shape_cast %112 : vector<16x16xf32> to vector<1x16x16xf32>
    tpu.vector_store %arg5[%c1_55, %c0_56, %c0_57], %124 {strides = array<i32>} : memref<2x16x16xf32, #tpu.memory_space<vmem>>, vector<1x16x16xf32>,
    return
  }
}

</mosaic_0001>

<bundles_post_ra>
// kernel: squeeze.1
= control target key start
LH: loop header
LB: loop body
LE: loop exit
PB: predicated region body
PF: predicated region fallthrough
CT: control target
= control target key end

     0   :  { %s8_s6 = smov 3  ;;  %s22_s9 = smov 3  ;;  %s165_s0 = inlined_call_operand.vmem [shape: f32[1,16,2], index: 0, kind: input, shape index: {}]   ;;  %s166_s1 = inlined_call_operand.hbm [shape: f32[2,16], index: 1, kind: output, shape index: {}]  }
   0x1   :  { %v72_v0 = vld [vmem:[%s165_s0 + $0x7] ss:$8 sm:%s8_s6]   ;;  %s111_s10 = smov 14   ;;  %v74_v1 = vld [vmem:[%s165_s0 + $0x5] ss:$8 sm:%s22_s9]   ;;  %s15_s13 = smov 3 }
   0x2   :  { %10 = vrot.lane.b32.xlu0 %v72_v0, %s111_s10  ;;  %s112_s14 = smov 10   ;;  %v73_v2 = vld [vmem:[%s165_s0 + $0x6] ss:$8 sm:%s15_s13]   ;;  %s29_s17 = smov 3 }
   0x3   :  { %24 = vrot.lane.b32.xlu1 %v74_v1, %s112_s14 }
   0x4   :  { %2 = vsyncpa [#allocation1], 0  ;;  %v75_v3 = vld [vmem:[%s165_s0 + $0x4] ss:$8 sm:%s29_s17]   ;;  %s36_s20 = smov 3  ;;  %s43_s21 = smov 3 }
   0x5   :  { %s113_s22 = smov 12   ;;  %vm5_vm0 = vcmask 15360   ;;  %s114_s23 = smov 8   ;;  %v76_v4 = vld [vmem:[%s165_s0 + $0x3] ss:$8 sm:%s36_s20]   ;;  %vm12_vm1 = vcmask 130160  }
   0x6   :  { %17 = vrot.lane.b32.xlu0 %v73_v2, %s113_s22  ;;  %s3_s26 = smov 3  ;;  %v77_v5 = vld [vmem:[%s165_s0 + $0x2] ss:$8 sm:%s43_s21]   ;;  %s50_s29 = smov 3  ;;  %vm19_vm2 = vcmask 113760   ;;  %vm26_vm3 = vcmask 97360  }
   0x7   :  { %31 = vrot.lane.b32.xlu1 %v75_v3, %s114_s23  ;;  %v4_v6 = vld [vmem:[%s165_s0] ss:$8 sm:%s3_s26]   ;;  %s115_s3 = smov 6   ;;  %s116_s4 = smov 4   ;;  %vm33_vm4 = vcmask 80960   ;;  %vm40_vm5 = vcmask 64560  }
   0x8   :  { %6 = vst.msk [vmem:[#allocation2] sm:$0x3] %vm5_vm0, %v4_v6   ;;  %v78_v7 = vld [vmem:[%s165_s0 + $0x1] ss:$8 sm:%s50_s29]   ;;  %s117_s0 = smov 2   ;;  %vm47_vm6 = vcmask 48160  }
   0x9   :  { %vm54_vm7 = vcmask 31760   ;;  %s118_s7 = smov [#allocation0]  }
   0xa   :  { %38 = vrot.lane.b32.xlu0 %v76_v4, %s115_s3  ;;  %s66_s8 = sshll.u32 %s118_s7, 4  ;;  %s67_s8 = int_to_ptr.vmem [resolvable:$true] %s66_s8 }
   0xb   :  { %45 = vrot.lane.b32.xlu1 %v77_v5, %s116_s4  ;;  %s87_s9 = scalar_lea.vmem %s67_s8, 32  ;;  %p92_p1 = scmp.lt.s32.totalorder %s67_s8, %s67_s8 }
   0xc   :  { %p88_p0 = scmp.ne.s32.totalorder %s67_s8, %s87_s9  ;;  %p93_p2 = scmp.lt.s32.totalorder %s87_s9, %s87_s9 }
   0xe   :  { %52 = vrot.lane.b32.xlu0 %v78_v7, %s117_s0  ;;  %p94_p3 = por %p93_p2, %p92_p1 }
  0x10   :  { %p95_p4 = pnand %p94_p3, %p88_p0 }
  0x74   :  { %v11_v8 = vpop.permute.xlu0 %10  }
  0x75   :  { %13 = vst.msk [vmem:[#allocation2] sm:$0x3] %vm12_vm1, %v11_v8   ;;  %v25_v9 = vpop.permute.xlu1 %24  }
  0x78   :  { %v18_v10 = vpop.permute.xlu0 %17  }
  0x79   :  { %20 = vst.msk [vmem:[#allocation2] sm:$0x3] %vm19_vm2, %v18_v10   ;;  %v32_v11 = vpop.permute.xlu1 %31  }
  0x7a   :  { %27 = vst.msk [vmem:[#allocation2] sm:$0x3] %vm26_vm3, %v25_v9  }
  0x7b   :  { %34 = vst.msk [vmem:[#allocation2] sm:$0x3] %vm33_vm4, %v32_v11  }
  0x7c   :  { %v39_v12 = vpop.permute.xlu0 %38  }
  0x7d   :  { %41 = vst.msk [vmem:[#allocation2] sm:$0x3] %vm40_vm5, %v39_v12   ;;  %v46_v13 = vpop.permute.xlu1 %45  }
  0x7e   :  { %48 = vst.msk [vmem:[#allocation2] sm:$0x3] %vm47_vm6, %v46_v13  }
  0x80   :  { %v53_v14 = vpop.permute.xlu0 %52  }
  0x81   :  { %55 = vst.msk [vmem:[#allocation2] sm:$0x3] %vm54_vm7, %v53_v14  }
  0x88   :  { %v59_v15 = vld [vmem:[#allocation2] sm:$0x3] }
  0x89   :  { %61 = vst [vmem:[#allocation0] sm:$0x3] %v59_v15 }
  0x8a   :  { %98 = shalt.err (!%p95_p4)
}
  0x8b   :  { %s99_s12 = scalar_lea.hbm %s166_s1, 32 }
  0x8c   :  { %p100_p5 = scmp.ne.s32.totalorder %s166_s1, %s99_s12  ;;  %p103_p6 = scmp.lt.u32.totalorder %s99_s12, %s166_s1 }
  0x8e   :  { %p105_p7 = pnand %p103_p6, %p100_p5 }
  0x90   :  { %108 = shalt.err (!%p105_p7)
}
  0x91   :  { %69 = dma.vmem_to_hbm [thread:$0]  %s67_s8, 32, %s166_s1, [#allocation1]  }
  0x92   :  { %109 = dma.done.wait [#allocation1], 32  }
  0x93   :  { %110 = vsyncadd [#allocation1], 4294967264 }
  0x94   :  { %71 = vsyncpa [#allocation1], 1 }

// kernel: decoder_forward.1
= control target key start
LH: loop header
LB: loop body
LE: loop exit
PB: predicated region body
PF: predicated region fallthrough
CT: control target
= control target key end

     0   :  { %v20_v0 = vlaneseq  ;;  %v1800_v4 = vmov 0.0   ;;  %vm28_vm1 = vcmask 64512   ;;  %vm70_vm2 = vcmask 130048   ;;  %s1801_s22 = smov 16   ;;  %s1804_s28 = smov 64   ;;  %s2194_s0 = inlined_call_operand.vmem [shape: f32[8,8], index: 0, kind: input, shape index: {}]   ;;  %s2195_s2 = inlined_call_operand.vmem [shape: f32[2,16,16], index: 2, kind: input, shape index: {}, may-alias: {2,5}]   ;;  %s2196_s1 = inlined_call_operand.vmem [shape: f32[16,16], index: 1, kind: input, shape index: {}]   ;;  %s2197_s3 = inlined_call_operand.vmem [shape: f32[328,48], index: 3, kind: input, shape index: {}]   ;;  %s2198_s5 = inlined_call_operand.vmem [shape: f32[2,16,16], index: 5, kind: output, shape index: {1}, may-alias: {2,5}]   ;;  %s2199_s4 = inlined_call_operand.vmem [shape: f32[1,16,2], index: 4, kind: output, shape index: {0}]  }
   0x1   :  { %v19_v3 = vld [vmem:[%s2194_s0] sm:$0xff]  ;;  %71 = vst.msk [vmem:[#allocation2] sm:$0xff] %vm70_vm2, %v1800_v4  ;;  %72 = vst.msk [vmem:[#allocation2 + $0x8] sm:$0xff] %vm70_vm2, %v1800_v4  ;;  %s1802_s0 = smov 8   ;;  %v1853_v15 = vld [vmem:[%s2195_s2 + $0x8] sm:$0xff]  ;;  %vm78_vm4 = vcmask 130112  }
   0x2   :  { %v21_v1 = vshrl.u32 %v20_v0, 7  ;;  %v23_v2 = vand.u32 127, %v20_v0  ;;  %v1843_v8 = vld [vmem:[%s2195_s2] sm:$0xff]  ;;  %v91_v20 = vld [vmem:[%s2196_s1 + $0x8] sm:$0xff]  ;;  %v286_v31 = vld [vmem:[%s2197_s3 + $0x10] sm:$0xff]  ;;  %vm281_vm5 = vcmask 523264  }
   0x3   :  { %94 = vrot.lane.b32.xlu1 %v1843_v8, %s1801_s22  ;;  %v90_v19 = vld [vmem:[%s2196_s1] sm:$0xff]  ;;  %s1803_s1 = smov 32   ;;  %v285_v30 = vld [vmem:[%s2197_s3 + $0x8] sm:$0xff]  ;;  %v287_v33 = vld [vmem:[%s2197_s3 + $0x18] sm:$0xff]  ;;  %vm278_vm6 = vcmask 261120   ;;  %vm296_vm7 = vcmask 785408  }
   0x4   :  { %vm24_vm0 = vcmp.eq.s32.totalorder %v21_v1, %v23_v2  ;;  %v284_v29 = vld [vmem:[%s2197_s3] sm:$0xff]  ;;  %v1672_v34 = vpack.c.bf16 %v287_v33, %v286_v31  ;;  %v289_v36 = vld [vmem:[%s2197_s3 + $0x28] sm:$0xff]  ;;  %v290_v38 = vld [vmem:[%s2197_s3 + $0x30] sm:$0xff]  ;;  %vm579_vm8 = vcmask 392192   ;;  %s1805_s18 = smov 112   ;;  %vm1377_vm9 = vcmask 15360  }
   0x5   :  { %v1395_v5 = vsel %vm24_vm0, 1.0, %v1800_v4  ;;  %v1668_v32 = vpack.c.bf16 %v285_v30, %v284_v29  ;;  %v288_v35 = vld [vmem:[%s2197_s3 + $0x20] sm:$0xff]  ;;  %v291_v39 = vld [vmem:[%s2197_s3 + $0x38] sm:$0xff]  ;;  %v293_v42 = vld [vmem:[%s2197_s3 + $0x48] sm:$0xff] }
   0x6   :  { %v27_v6 = vadd.f32 %v1395_v5, %v19_v3  ;;  %v1676_v37 = vpack.c.bf16 %v289_v36, %v288_v35  ;;  %v1680_v40 = vpack.c.bf16 %v291_v39, %v290_v38  ;;  %v292_v41 = vld [vmem:[%s2197_s3 + $0x40] sm:$0xff]  ;;  %v294_v44 = vld [vmem:[%s2197_s3 + $0x50] sm:$0xff]  ;;  %v295_v45 = vld [vmem:[%s2197_s3 + $0x58] sm:$0xff] }
   0x7   :  { %v1684_v43 = vpack.c.bf16 %v293_v42, %v292_v41  ;;  %v1688_v46 = vpack.c.bf16 %v295_v45, %v294_v44  ;;  %v1946_v61 = vld [vmem:[%s2197_s3 + $0x130] ss:$0 sm:$0xff] }
   0x8   :  { %v29_v7 = vsel %vm28_vm1, %v27_v6, 0.0 }
   0x9   :  { %30 = vadd.xlane.f32.xlu0 %v29_v7 }
  0x75   :  { %v1863_v17 = vpop.permute.xlu1 %94 }
  0x76   :  { %v1875_v22 = vsel %vm70_vm2, %v90_v19, %v1863_v17 }
  0x96   :  { %v31_v9 = vpop.xlane.xlu0 %30 }
  0x97   :  { %1774 = vrcp.f32 %v31_v9 }
  0xa1   :  { %v1775_v10 = vpop.eup %1774 }
  0xa2   :  { %v34_v11 = vand.u32 2147483647, %v1775_v10 }
  0xa4   :  { %vm35_vm3 = vcmp.eq.f32.partialorder %v34_v11, inf }
  0xa5   :  { %v36_v12 = vsel %vm35_vm3, 0.0, %v1775_v10 }
  0xa6   :  { %v37_v13 = vmul.f32 %v36_v12, %v27_v6 }
  0xa8   :  { %38 = vxpose.xlu0.b32.start.end [1/1] (short) (narrow) %v37_v13, 8 }
 0x128   :  { %v54_v14 = vpop.trf.xlu0 }
 0x129   :  { %73 = vst.msk [vmem:[#allocation2] sm:$0xff] %vm28_vm1, %v54_v14  ;;  %75 = vrot.lane.b32.xlu1 %v54_v14, %s1802_s0 }
 0x12d   :  { %96 = vrot.lane.b32.xlu1 %v1853_v15, %s1801_s22 }
 0x130   :  { %v1857_v16 = vld [vmem:[#allocation2] sm:$0xff] }
 0x131   :  { %1517 = vmatprep.mubr.msk.f32.mxu0 %vm70_vm2, %v1857_v16  ;;  %1524 = vmatprep.mubr.msk.f32.mxu1 %vm70_vm2, %v1857_v16 }
 0x19b   :  { %v76_v18 = vpop.permute.xlu1 %75 }
 0x19c   :  { %79 = vst.msk [vmem:[#allocation2 + $0x8] sm:$0xff] %vm78_vm4, %v76_v18 }
 0x19f   :  { %v1871_v21 = vpop.permute.xlu1 %96 }
 0x1a0   :  { %v1879_v23 = vsel %vm70_vm2, %v91_v20, %v1871_v21  ;;  %v575_v20 = vld [vmem:[%s2197_s3 + $0xd0] sm:$0xff] }
 0x1a1   :  { %v1660_v24 = vpack.c.bf16 %v1879_v23, %v1875_v22 }
 0x1a3   :  { %1661 = vmatprep.subr.bf16.mxu0 %v1660_v24  ;;  %v1883_v25 = vld [vmem:[#allocation2 + $0x8] sm:$0xff] }
 0x1a4   :  { %1663 = vmatpush3.bf16.msra.mxu0 %v1660_v24 }
 0x1a5   :  { %1669 = vmatprep.subr.bf16.mxu0 %v1668_v32 }
 0x1a7   :  { %1518 = vmatmul.mubr.msk.f32.vlgmr.msra.gmra.mrb[0].mxu0 %vm70_vm2, %v1883_v25 }
 0x1a8   :  { %1671 = vmatpush3.bf16.msra.mxu0 %v1668_v32 }
 0x1a9   :  { %1673 = vmatprep.subr.bf16.mxu0 %v1672_v34 }
 0x1ac   :  { %1675 = vmatpush3.bf16.msra.mxu0 %v1672_v34 }
 0x1ad   :  { %1677 = vmatprep.subr.bf16.mxu0 %v1676_v37 }
 0x1b0   :  { %1679 = vmatpush3.bf16.msra.mxu0 %v1676_v37 }
 0x1b1   :  { %1681 = vmatprep.subr.bf16.mxu0 %v1680_v40 }
 0x1b4   :  { %1683 = vmatpush3.bf16.msra.mxu0 %v1680_v40 }
 0x1b5   :  { %1685 = vmatprep.subr.bf16.mxu0 %v1684_v43 }
 0x1b8   :  { %1687 = vmatpush3.bf16.msra.mxu0 %v1684_v43 }
 0x1b9   :  { %1689 = vmatprep.subr.bf16.mxu0 %v1688_v46 }
 0x1bc   :  { %1691 = vmatpush3.bf16.msra.mxu0 %v1688_v46 }
 0x27a   :  { %v1519_v26 = vpop.f32.mrb[0].mxu0 }
 0x27b   :  { %266 = vrot.lane.b32.xlu1 %v1519_v26, %s1803_s1  ;;  %v174_v27 = vpop.f32.mrb[1].mxu0 }
 0x27c   :  { %v1664_v28 = vpack.c.bf16 %v1519_v26, %v174_v27  ;;  %v577_v26 = vld [vmem:[%s2197_s3 + $0xe0] sm:$0xff] }
 0x27e   :  { %1665 = vmatprep.subr.bf16.mxu1 %v1664_v28 }
 0x27f   :  { %264 = vrot.lane.b32.xlu1 %v174_v27, %s1803_s1  ;;  %1667 = vmatpush3.bf16.msra.mxu1 %v1664_v28  ;;  %v578_v27 = vld [vmem:[%s2197_s3 + $0xe8] sm:$0xff] }
 0x280   :  { %v1708_v28 = vpack.c.bf16 %v578_v27, %v577_v26  ;;  %v892_v26 = vld [vmem:[%s2197_s3 + $0xa8] sm:$0xff] }
 0x282   :  { %1525 = vmatmul.mubr.msk.f32.vlgmr.msra.gmra.mrb[0].mxu1 %vm70_vm2, %v1883_v25 }
 0x283   :  { %1558 = vmatprep.mubr.msk.f32.mxu1 %vm70_vm2, %v1857_v16 }
 0x2ed   :  { %v267_v53 = vpop.permute.xlu1 %266 }
 0x2ee   :  { %v280_v58 = vsel %vm278_vm6, %v1879_v23, %v267_v53  ;;  %v2011_v53 = vld [vmem:[%s2195_s2 + $0x10] sm:$0xff] }
 0x2f1   :  { %v265_v54 = vpop.permute.xlu1 %264 }
 0x2f2   :  { %v279_v55 = vsel %vm278_vm6, %v1875_v22, %v265_v54 }
 0x355   :  { %v1526_v47 = vpop.f32.mrb[0].mxu1 }
 0x356   :  { %v249_v48 = vpop.f32.mrb[1].mxu1  ;;  %v259_v50 = vmul.f32 2.0, %v1526_v47 }
 0x357   :  { %v258_v49 = vmul.f32 2.0, %v249_v48 }
 0x358   :  { %v261_v52 = vsub.f32 %v259_v50, %v1879_v23  ;;  %v576_v23 = vld [vmem:[%s2197_s3 + $0xd8] sm:$0xff] }
 0x359   :  { %v260_v51 = vsub.f32 %v258_v49, %v1875_v22  ;;  %v1704_v24 = vpack.c.bf16 %v576_v23, %v575_v20  ;;  %v889_v20 = vld [vmem:[%s2197_s3 + $0x90] sm:$0xff] }
 0x35b   :  { %272 = vrot.lane.b32.xlu1 %v260_v51, %s1804_s28 }
 0x35f   :  { %274 = vrot.lane.b32.xlu1 %v261_v52, %s1804_s28 }
 0x3cd   :  { %v273_v56 = vpop.permute.xlu1 %272 }
 0x3ce   :  { %v282_v57 = vsel %vm281_vm5, %v279_v55, %v273_v56 }
 0x3cf   :  { %1551 = vmatprep.mubr.msk.f32.mxu0 %vm296_vm7, %v282_v57 }
 0x3d1   :  { %v275_v59 = vpop.permute.xlu1 %274 }
 0x3d2   :  { %v283_v60 = vsel %vm281_vm5, %v280_v58, %v275_v59 }
 0x3d3   :  { %1552 = vmatmul.mubr.msk.f32.vlgmr.msra.gmra.mrb[2].mxu0 %vm296_vm7, %v283_v60 }
 0x3d4   :  { %1594 = vmatprep.mubr.msk.f32.mxu0 %vm70_vm2, %v1857_v16 }
 0x4a6   :  { %v1948_v62 = vpop.f32.mrb[2].mxu0 }
 0x4a7   :  { %v384_v63 = vadd.f32 %v1948_v62, %v1946_v61  ;;  %v1952_v0 = vpop.f32.mrb[3].mxu0 }
 0x4a8   :  { %v383_v1 = vadd.f32 %v1946_v61, %v1952_v0 }
 0x4a9   :  { %v1406_v2 = vmul.f32 -1.442695, %v384_v63 }
 0x4aa   :  { %v1405_v3 = vmul.f32 -1.442695, %v383_v1 }
 0x4ab   :  { %1776 = vpow2.f32 %v1406_v2 }
 0x4ac   :  { %1778 = vpow2.f32 %v1405_v3 }
 0x4b5   :  { %v1777_v4 = vpop.eup %1776 }
 0x4b6   :  { %v1779_v5 = vpop.eup %1778  ;;  %v392_v6 = vadd.f32 1.0, %v1777_v4 }
 0x4b7   :  { %v391_v7 = vadd.f32 1.0, %v1779_v5 }
 0x4b8   :  { %1780 = vrcp.f32 %v392_v6 }
 0x4b9   :  { %1782 = vrcp.f32 %v391_v7 }
 0x4c2   :  { %v1956_v9 = vpop.eup %1780 }
 0x4c3   :  { %v1958_v10 = vpop.eup %1782  ;;  %v398_v11 = vmul.f32 %v1956_v9, %v1853_v15  ;;  %v574_v15 = vld [vmem:[%s2197_s3 + $0xc8] sm:$0xff]  ;;  %v678_v54 = vsub.f32 1.0, %v1956_v9  ;;  %v676_v58 = vmul.f32 %v1956_v9, %v1871_v21 }
 0x4c4   :  { %v397_v12 = vmul.f32 %v1958_v10, %v1843_v8  ;;  %v573_v8 = vld [vmem:[%s2197_s3 + $0xc0] sm:$0xff]  ;;  %v677_v57 = vsub.f32 1.0, %v1958_v10 }
 0x4c5   :  { %v1700_v22 = vpack.c.bf16 %v574_v15, %v573_v8  ;;  %v888_v8 = vld [vmem:[%s2197_s3 + $0x88] sm:$0xff] }
 0x4c6   :  { %v1692_v13 = vpack.c.bf16 %v398_v11, %v397_v12 }
 0x4c8   :  { %1693 = vmatprep.subr.bf16.mxu1 %v1692_v13 }
 0x4c9   :  { %1695 = vmatpush3.bf16.msra.mxu1 %v1692_v13 }
 0x4cc   :  { %1559 = vmatmul.mubr.msk.f32.vlgmr.msra.gmra.mrb[2].mxu1 %vm70_vm2, %v1883_v25 }
 0x4cd   :  { %1565 = vmatprep.mubr.msk.f32.mxu1 %vm70_vm2, %v1857_v16 }
 0x59f   :  { %v1560_v14 = vpop.f32.mrb[2].mxu1 }
 0x5a0   :  { %557 = vrot.lane.b32.xlu1 %v1560_v14, %s1801_s22  ;;  %v465_v18 = vpop.f32.mrb[3].mxu1 }
 0x5a1   :  { %v1696_v19 = vpack.c.bf16 %v1560_v14, %v465_v18  ;;  %v886_v14 = vld [vmem:[%s2197_s3 + $0x78] sm:$0xff] }
 0x5a3   :  { %1697 = vmatprep.subr.bf16.mxu1 %v1696_v19 }
 0x5a4   :  { %555 = vrot.lane.b32.xlu1 %v465_v18, %s1801_s22  ;;  %1699 = vmatpush3.bf16.msra.mxu1 %v1696_v19  ;;  %v887_v19 = vld [vmem:[%s2197_s3 + $0x80] sm:$0xff] }
 0x5a5   :  { %1701 = vmatprep.subr.bf16.mxu1 %v1700_v22  ;;  %v1728_v15 = vpack.c.bf16 %v888_v8, %v887_v19 }
 0x5a7   :  { %1566 = vmatmul.mubr.msk.f32.vlgmr.msra.gmra.mrb[4].mxu1 %vm70_vm2, %v1883_v25 }
 0x5a8   :  { %1703 = vmatpush3.bf16.msra.mxu1 %v1700_v22  ;;  %v890_v22 = vld [vmem:[%s2197_s3 + $0x98] sm:$0xff] }
 0x5a9   :  { %1705 = vmatprep.subr.bf16.mxu1 %v1704_v24  ;;  %v1732_v23 = vpack.c.bf16 %v890_v22, %v889_v20 }
 0x5ac   :  { %1707 = vmatpush3.bf16.msra.mxu1 %v1704_v24  ;;  %v891_v24 = vld [vmem:[%s2197_s3 + $0xa0] sm:$0xff] }
 0x5ad   :  { %1709 = vmatprep.subr.bf16.mxu1 %v1708_v28  ;;  %v1736_v27 = vpack.c.bf16 %v892_v26, %v891_v24 }
 0x5b0   :  { %1711 = vmatpush3.bf16.msra.mxu1 %v1708_v28  ;;  %v893_v28 = vld [vmem:[%s2197_s3 + $0xb0] sm:$0xff] }
 0x612   :  { %v558_v35 = vpop.permute.xlu1 %557 }
 0x613   :  { %v570_v40 = vsel %vm70_vm2, %v398_v11, %v558_v35 }
 0x616   :  { %v556_v36 = vpop.permute.xlu1 %555 }
 0x617   :  { %v569_v37 = vsel %vm70_vm2, %v397_v12, %v556_v36 }
 0x67a   :  { %v1567_v29 = vpop.f32.mrb[4].mxu1 }
 0x67b   :  { %v540_v30 = vpop.f32.mrb[5].mxu1  ;;  %v550_v32 = vmul.f32 2.0, %v1567_v29  ;;  %v894_v29 = vld [vmem:[%s2197_s3 + $0xb8] sm:$0xff] }
 0x67c   :  { %v549_v31 = vmul.f32 2.0, %v540_v30  ;;  %v1740_v30 = vpack.c.bf16 %v894_v29, %v893_v28 }
 0x67d   :  { %v552_v34 = vsub.f32 %v550_v32, %v398_v11  ;;  %v884_v11 = vld [vmem:[%s2197_s3 + $0x68] sm:$0xff] }
 0x67e   :  { %v551_v33 = vsub.f32 %v549_v31, %v397_v12  ;;  %v885_v12 = vld [vmem:[%s2197_s3 + $0x70] sm:$0xff] }
 0x67f   :  { %v1724_v18 = vpack.c.bf16 %v886_v14, %v885_v12 }
 0x680   :  { %563 = vrot.lane.b32.xlu1 %v551_v33, %s1803_s1 }
 0x684   :  { %565 = vrot.lane.b32.xlu1 %v552_v34, %s1803_s1 }
 0x6f2   :  { %v564_v38 = vpop.permute.xlu1 %563 }
 0x6f3   :  { %v571_v39 = vsel %vm278_vm6, %v569_v37, %v564_v38 }
 0x6f4   :  { %1580 = vmatprep.mubr.msk.f32.mxu1 %vm579_vm8, %v571_v39 }
 0x6f6   :  { %v566_v41 = vpop.permute.xlu1 %565 }
 0x6f7   :  { %v572_v42 = vsel %vm278_vm6, %v570_v40, %v566_v41 }
 0x6f8   :  { %1581 = vmatmul.mubr.msk.f32.vlgmr.msra.gmra.mrb[6].mxu1 %vm579_vm8, %v572_v42 }
 0x6f9   :  { %1587 = vmatprep.mubr.msk.f32.mxu1 %vm70_vm2, %v1857_v16 }
 0x7cb   :  { %v1582_v43 = vpop.f32.mrb[6].mxu1 }
 0x7cc   :  { %v652_v44 = vpop.f32.mrb[7].mxu1 }
 0x7cd   :  { %663 = vrot.lane.b32.xlu1 %v652_v44, %s1803_s1 }
 0x7d1   :  { %665 = vrot.lane.b32.xlu1 %v1582_v43, %s1803_s1 }
 0x83f   :  { %v664_v45 = vpop.permute.xlu1 %663 }
 0x840   :  { %v669_v46 = vadd.f32 %v664_v45, %v1952_v0  ;;  %v2026_v0 = vld [vmem:[%s2195_s2 + $0x18] sm:$0xff] }
 0x841   :  { %v2101_v45 = vld [vmem:[%s2197_s3 + $0x138] ss:$0 sm:$0xff] }
 0x842   :  { %v671_v47 = vadd.f32 %v1946_v61, %v669_v46 }
 0x843   :  { %v666_v48 = vpop.permute.xlu1 %665 }
 0x844   :  { %1784 = vtanh.f32 %v671_v47  ;;  %v670_v49 = vadd.f32 %v1948_v62, %v666_v48  ;;  %v675_v62 = vmul.f32 %v1958_v10, %v1863_v17  ;;  %v883_v10 = vld [vmem:[%s2197_s3 + $0x60] sm:$0xff] }
 0x845   :  { %v1720_v13 = vpack.c.bf16 %v884_v11, %v883_v10 }
 0x846   :  { %v672_v50 = vadd.f32 %v1946_v61, %v670_v49 }
 0x848   :  { %1786 = vtanh.f32 %v672_v50 }
 0x84e   :  { %v1785_v51 = vpop.eup %1784 }
 0x84f   :  { %681 = vrot.lane.b32.xlu0 %v1785_v51, %s1805_s18 }
 0x852   :  { %v1787_v52 = vpop.eup %1786 }
 0x853   :  { %683 = vrot.lane.b32.xlu1 %v1787_v52, %s1805_s18 }
 0x857   :  { %701 = vrot.lane.b32.xlu1 %v2011_v53, %s1801_s22 }
 0x8c1   :  { %v682_v55 = vpop.permute.xlu0 %681 }
 0x8c2   :  { %v687_v60 = vmul.f32 %v682_v55, %v677_v57 }
 0x8c4   :  { %v689_v63 = vadd.f32 %v687_v60, %v675_v62 }
 0x8c5   :  { %v684_v56 = vpop.permute.xlu1 %683 }
 0x8c6   :  { %v688_v59 = vmul.f32 %v684_v56, %v678_v54 }
 0x8c8   :  { %v690_v61 = vadd.f32 %v688_v59, %v676_v58 }
 0x8c9   :  { %v2030_v21 = vpop.permute.xlu1 %701 }
 0x8ca   :  { %695 = vrot.lane.b32.xlu1 %v690_v61, %s1805_s18 }
 0x8ce   :  { %693 = vrot.lane.b32.xlu1 %v689_v63, %s1805_s18 }
 0x8d2   :  { %703 = vrot.lane.b32.xlu1 %v2026_v0, %s1801_s22 }
 0x93c   :  { %v696_v1 = vpop.permute.xlu1 %695 }
 0x93d   :  { %1381 = vst.msk [vmem:[%s2198_s5 + $0x8] sm:$0xff] %vm70_vm2, %v696_v1 }
 0x940   :  { %v694_v17 = vpop.permute.xlu1 %693 }
 0x941   :  { %1380 = vst.msk [vmem:[%s2198_s5] sm:$0xff] %vm70_vm2, %v694_v17  ;;  %v707_v3 = vsel %vm70_vm2, %v694_v17, %v2030_v21 }
 0x944   :  { %v2040_v2 = vpop.permute.xlu1 %703 }
 0x945   :  { %v708_v4 = vsel %vm70_vm2, %v696_v1, %v2040_v2 }
 0x946   :  { %v1712_v5 = vpack.c.bf16 %v708_v4, %v707_v3 }
 0x948   :  { %1713 = vmatprep.subr.bf16.mxu1 %v1712_v5 }
 0x949   :  { %1715 = vmatpush3.bf16.msra.mxu1 %v1712_v5  ;;  %v1176_v5 = vld [vmem:[%s2197_s3 + $0x118] sm:$0xff] }
 0x94a   :  { %1721 = vmatprep.subr.bf16.mxu1 %v1720_v13 }
 0x94c   :  { %1588 = vmatmul.mubr.msk.f32.vlgmr.msra.gmra.mrb[8].mxu1 %vm70_vm2, %v1883_v25 }
 0x94d   :  { %1723 = vmatpush3.bf16.msra.mxu1 %v1720_v13 }
 0x94e   :  { %1725 = vmatprep.subr.bf16.mxu1 %v1724_v18 }
 0x951   :  { %1727 = vmatpush3.bf16.msra.mxu1 %v1724_v18 }
 0x952   :  { %1729 = vmatprep.subr.bf16.mxu1 %v1728_v15 }
 0x955   :  { %1731 = vmatpush3.bf16.msra.mxu1 %v1728_v15 }
 0x956   :  { %1733 = vmatprep.subr.bf16.mxu1 %v1732_v23 }
 0x959   :  { %1735 = vmatpush3.bf16.msra.mxu1 %v1732_v23 }
 0x95a   :  { %1737 = vmatprep.subr.bf16.mxu1 %v1736_v27 }
 0x95d   :  { %1739 = vmatpush3.bf16.msra.mxu1 %v1736_v27 }
 0x95e   :  { %1741 = vmatprep.subr.bf16.mxu1 %v1740_v30 }
 0x961   :  { %1743 = vmatpush3.bf16.msra.mxu1 %v1740_v30 }
 0xa1f   :  { %v1589_v6 = vpop.f32.mrb[8].mxu1 }
 0xa20   :  { %867 = vrot.lane.b32.xlu1 %v1589_v6, %s1803_s1  ;;  %v775_v7 = vpop.f32.mrb[9].mxu1 }
 0xa21   :  { %v1716_v9 = vpack.c.bf16 %v1589_v6, %v775_v7 }
 0xa23   :  { %1717 = vmatprep.subr.bf16.mxu0 %v1716_v9 }
 0xa24   :  { %865 = vrot.lane.b32.xlu1 %v775_v7, %s1803_s1  ;;  %1719 = vmatpush3.bf16.msra.mxu0 %v1716_v9 }
 0xa27   :  { %1595 = vmatmul.mubr.msk.f32.vlgmr.msra.gmra.mrb[4].mxu0 %vm70_vm2, %v1883_v25 }
 0xa28   :  { %1628 = vmatprep.mubr.msk.f32.mxu0 %vm70_vm2, %v1857_v16 }
 0xa92   :  { %v868_v37 = vpop.permute.xlu1 %867 }
 0xa93   :  { %v880_v42 = vsel %vm278_vm6, %v708_v4, %v868_v37 }
 0xa96   :  { %v866_v38 = vpop.permute.xlu1 %865 }
 0xa97   :  { %v879_v39 = vsel %vm278_vm6, %v707_v3, %v866_v38 }
 0xafa   :  { %v1596_v31 = vpop.f32.mrb[4].mxu0 }
 0xafb   :  { %v850_v32 = vpop.f32.mrb[5].mxu0  ;;  %v860_v34 = vmul.f32 2.0, %v1596_v31 }
 0xafc   :  { %v859_v33 = vmul.f32 2.0, %v850_v32 }
 0xafd   :  { %v862_v36 = vsub.f32 %v860_v34, %v708_v4  ;;  %v83_v34 = vld [vmem:[%s2197_s3 + $0x128] sm:$0xff] }
 0xafe   :  { %v861_v35 = vsub.f32 %v859_v33, %v707_v3  ;;  %v1174_v3 = vld [vmem:[%s2197_s3 + $0x108] sm:$0xff]  ;;  %v82_v33 = vld [vmem:[%s2197_s3 + $0x120] sm:$0xff] }
 0xb00   :  { %873 = vrot.lane.b32.xlu1 %v861_v35, %s1804_s28  ;;  %v1764_v35 = vpack.c.bf16 %v83_v34, %v82_v33 }
 0xb04   :  { %875 = vrot.lane.b32.xlu1 %v862_v36, %s1804_s28 }
 0xb72   :  { %v874_v40 = vpop.permute.xlu1 %873 }
 0xb73   :  { %v881_v41 = vsel %vm281_vm5, %v879_v39, %v874_v40 }
 0xb74   :  { %1621 = vmatprep.mubr.msk.f32.mxu1 %vm296_vm7, %v881_v41 }
 0xb76   :  { %v876_v43 = vpop.permute.xlu1 %875 }
 0xb77   :  { %v882_v44 = vsel %vm281_vm5, %v880_v42, %v876_v43 }
 0xb78   :  { %1622 = vmatmul.mubr.msk.f32.vlgmr.msra.gmra.mrb[10].mxu1 %vm296_vm7, %v882_v44 }
 0xc4b   :  { %v2103_v46 = vpop.f32.mrb[10].mxu1 }
 0xc4c   :  { %v982_v47 = vadd.f32 %v2103_v46, %v2101_v45  ;;  %v2107_v48 = vpop.f32.mrb[11].mxu1 }
 0xc4d   :  { %v981_v49 = vadd.f32 %v2101_v45, %v2107_v48 }
 0xc4e   :  { %v1421_v50 = vmul.f32 -1.442695, %v982_v47 }
 0xc4f   :  { %v1420_v51 = vmul.f32 -1.442695, %v981_v49 }
 0xc50   :  { %1788 = vpow2.f32 %v1421_v50 }
 0xc51   :  { %1790 = vpow2.f32 %v1420_v51 }
 0xc5a   :  { %v1789_v52 = vpop.eup %1788 }
 0xc5b   :  { %v1791_v54 = vpop.eup %1790  ;;  %v990_v55 = vadd.f32 1.0, %v1789_v52 }
 0xc5c   :  { %v989_v56 = vadd.f32 1.0, %v1791_v54 }
 0xc5d   :  { %1792 = vrcp.f32 %v990_v55 }
 0xc5e   :  { %1794 = vrcp.f32 %v989_v56 }
 0xc67   :  { %v2111_v57 = vpop.eup %1792 }
 0xc68   :  { %v2113_v58 = vpop.eup %1794  ;;  %v996_v59 = vmul.f32 %v2111_v57, %v2026_v0  ;;  %v1173_v0 = vld [vmem:[%s2197_s3 + $0x100] sm:$0xff]  ;;  %v1275_v38 = vsub.f32 1.0, %v2111_v57  ;;  %v1273_v41 = vmul.f32 %v2111_v57, %v2040_v2 }
 0xc69   :  { %v995_v60 = vmul.f32 %v2113_v58, %v2011_v53  ;;  %v1171_v53 = vld [vmem:[%s2197_s3 + $0xf0] sm:$0xff]  ;;  %v1756_v4 = vpack.c.bf16 %v1174_v3, %v1173_v0  ;;  %v1274_v40 = vsub.f32 1.0, %v2113_v58  ;;  %v1272_v44 = vmul.f32 %v2113_v58, %v2030_v21  ;;  %v1428_v21 = vld [vmem:[%s2197_s3 + $0x140] ss:$0 sm:$0xff] }
 0xc6b   :  { %v1744_v61 = vpack.c.bf16 %v996_v59, %v995_v60 }
 0xc6d   :  { %1745 = vmatprep.subr.bf16.mxu0 %v1744_v61 }
 0xc6e   :  { %1747 = vmatpush3.bf16.msra.mxu0 %v1744_v61 }
 0xc71   :  { %1629 = vmatmul.mubr.msk.f32.vlgmr.msra.gmra.mrb[6].mxu0 %vm70_vm2, %v1883_v25 }
 0xc72   :  { %1635 = vmatprep.mubr.msk.f32.mxu0 %vm70_vm2, %v1857_v16  ;;  %v1172_v16 = vld [vmem:[%s2197_s3 + $0xf8] sm:$0xff] }
 0xc73   :  { %v1752_v17 = vpack.c.bf16 %v1172_v16, %v1171_v53 }
 0xd44   :  { %v1630_v62 = vpop.f32.mrb[6].mxu0 }
 0xd45   :  { %1155 = vrot.lane.b32.xlu0 %v1630_v62, %s1801_s22  ;;  %v1063_v63 = vpop.f32.mrb[7].mxu0 }
 0xd46   :  { %v1748_v1 = vpack.c.bf16 %v1630_v62, %v1063_v63  ;;  %1153 = vrot.lane.b32.xlu1 %v1063_v63, %s1801_s22 }
 0xd48   :  { %1749 = vmatprep.subr.bf16.mxu0 %v1748_v1 }
 0xd49   :  { %1751 = vmatpush3.bf16.msra.mxu0 %v1748_v1 }
 0xd4a   :  { %1753 = vmatprep.subr.bf16.mxu0 %v1752_v17 }
 0xd4c   :  { %1636 = vmatmul.mubr.msk.f32.vlgmr.msra.gmra.mrb[8].mxu0 %vm70_vm2, %v1883_v25  ;;  %v1175_v25 = vld [vmem:[%s2197_s3 + $0x110] sm:$0xff] }
 0xd4d   :  { %1755 = vmatpush3.bf16.msra.mxu0 %v1752_v17  ;;  %v1760_v6 = vpack.c.bf16 %v1176_v5, %v1175_v25 }
 0xd4e   :  { %1757 = vmatprep.subr.bf16.mxu0 %v1756_v4 }
 0xd51   :  { %1759 = vmatpush3.bf16.msra.mxu0 %v1756_v4 }
 0xd52   :  { %1761 = vmatprep.subr.bf16.mxu0 %v1760_v6 }
 0xd55   :  { %1763 = vmatpush3.bf16.msra.mxu0 %v1760_v6 }
 0xd56   :  { %1765 = vmatprep.subr.bf16.mxu0 %v1764_v35 }
 0xdb7   :  { %v1156_v14 = vpop.permute.xlu0 %1155 }
 0xdb8   :  { %v1154_v18 = vpop.permute.xlu1 %1153  ;;  %v1168_v20 = vsel %vm70_vm2, %v996_v59, %v1156_v14 }
 0xdb9   :  { %v1167_v8 = vsel %vm70_vm2, %v995_v60, %v1154_v18 }
 0xe1f   :  { %v1637_v7 = vpop.f32.mrb[8].mxu0 }
 0xe20   :  { %v1148_v9 = vmul.f32 2.0, %v1637_v7  ;;  %v1138_v10 = vpop.f32.mrb[9].mxu0 }
 0xe21   :  { %v1147_v11 = vmul.f32 2.0, %v1138_v10 }
 0xe22   :  { %v1150_v12 = vsub.f32 %v1148_v9, %v996_v59 }
 0xe23   :  { %v1149_v13 = vsub.f32 %v1147_v11, %v995_v60 }
 0xe24   :  { %1163 = vrot.lane.b32.xlu0 %v1150_v12, %s1803_s1 }
 0xe25   :  { %1161 = vrot.lane.b32.xlu1 %v1149_v13, %s1803_s1 }
 0xe96   :  { %v1164_v19 = vpop.permute.xlu0 %1163 }
 0xe97   :  { %v1162_v15 = vpop.permute.xlu1 %1161  ;;  %v1170_v23 = vsel %vm278_vm6, %v1168_v20, %v1164_v19 }
 0xe98   :  { %v1169_v22 = vsel %vm278_vm6, %v1167_v8, %v1162_v15 }
 0xe99   :  { %1650 = vmatprep.mubr.msk.f32.mxu0 %vm579_vm8, %v1169_v22 }
 0xe9a   :  { %1651 = vmatmul.mubr.msk.f32.vlgmr.msra.gmra.mrb[10].mxu0 %vm579_vm8, %v1170_v23 }
 0xe9b   :  { %1767 = vmatpush3.bf16.msra.mxu0 %v1764_v35 }
 0xf6d   :  { %v1652_v24 = vpop.f32.mrb[10].mxu0 }
 0xf6e   :  { %1262 = vrot.lane.b32.xlu0 %v1652_v24, %s1803_s1  ;;  %v1249_v26 = vpop.f32.mrb[11].mxu0 }
 0xf6f   :  { %1260 = vrot.lane.b32.xlu1 %v1249_v26, %s1803_s1 }
 0xfe0   :  { %v1263_v27 = vpop.permute.xlu0 %1262 }
 0xfe1   :  { %v1267_v28 = vadd.f32 %v2103_v46, %v1263_v27  ;;  %v1261_v29 = vpop.permute.xlu1 %1260 }
 0xfe2   :  { %v1266_v30 = vadd.f32 %v1261_v29, %v2107_v48 }
 0xfe3   :  { %v1269_v31 = vadd.f32 %v2101_v45, %v1267_v28 }
 0xfe4   :  { %v1268_v32 = vadd.f32 %v2101_v45, %v1266_v30 }
 0xfe5   :  { %1796 = vtanh.f32 %v1269_v31 }
 0xfe6   :  { %1798 = vtanh.f32 %v1268_v32 }
 0xfef   :  { %v1797_v36 = vpop.eup %1796 }
 0xff0   :  { %v1799_v37 = vpop.eup %1798  ;;  %1280 = vrot.lane.b32.xlu0 %v1797_v36, %s1805_s18 }
 0xff1   :  { %1278 = vrot.lane.b32.xlu1 %v1799_v37, %s1805_s18 }
0x1062   :  { %v1281_v39 = vpop.permute.xlu0 %1280 }
0x1063   :  { %v1285_v42 = vmul.f32 %v1281_v39, %v1275_v38  ;;  %v1279_v43 = vpop.permute.xlu1 %1278 }
0x1064   :  { %v1284_v45 = vmul.f32 %v1279_v43, %v1274_v40 }
0x1065   :  { %v1287_v46 = vadd.f32 %v1285_v42, %v1273_v41 }
0x1066   :  { %v1286_v47 = vadd.f32 %v1284_v45, %v1272_v44 }
0x1067   :  { %1296 = vrot.lane.b32.xlu0 %v1287_v46, %s1805_s18 }
0x1068   :  { %1294 = vrot.lane.b32.xlu1 %v1286_v47, %s1805_s18 }
0x10d9   :  { %v1297_v48 = vpop.permute.xlu0 %1296 }
0x10da   :  { %1432 = vst.msk [vmem:[%s2198_s5 + $0x18] sm:$0xff] %vm70_vm2, %v1297_v48  ;;  %v1295_v49 = vpop.permute.xlu1 %1294 }
0x10db   :  { %1431 = vst.msk [vmem:[%s2198_s5 + $0x10] sm:$0xff] %vm70_vm2, %v1295_v49  ;;  %1657 = vmatprep.mubr.msk.f32.mxu0 %vm70_vm2, %v1295_v49 }
0x10dc   :  { %1658 = vmatmul.mubr.msk.f32.vlgmr.msra.gmra.mrb[12].mxu0 %vm70_vm2, %v1297_v48 }
0x11af   :  { %v1659_v2 = vpop.f32.mrb[12].mxu0 }
0x11b0   :  { %v1374_v50 = vadd.f32 %v1659_v2, %v1428_v21  ;;  %v1368_v51 = vpop.f32.mrb[13].mxu0 }
0x11b1   :  { %v1369_v52 = vadd.f32 %v1428_v21, %v1368_v51 }
0x11b2   :  { %1379 = vst.msk [vmem:[%s2199_s4 + $0x8] sm:$0xff] %vm1377_vm9, %v1374_v50 }
0x11b3   :  { %1378 = vst.msk [vmem:[%s2199_s4] sm:$0xff] %vm1377_vm9, %v1369_v52 }

</bundles_post_ra>
